<compile_context>
chip_gen: v6e
topology: v6e:2x2x1
jax: 0.10.0
libtpu: 0.0.40
codegen_flags: <defaults>
</compile_context>

<pallas_src>
import functools

import jax
import jax.numpy as jnp
from jax.experimental import pallas as pl
from jax.experimental.pallas import tpu as pltpu


def _multi_net_kernel(x_ref, w1_ref, b1_ref, wh_ref, bh_ref, out_ref, *, renormalize):
    # In-kernel narrow cast of the activation (free VPU work, hidden under MXU).
    x = x_ref[...].astype(w1_ref.dtype)
    # Layer 1 for ALL nets at once: (tb, D_in) @ (D_in, nets*H) on the MXU.
    h = jnp.dot(x, w1_ref[...], preferred_element_type=jnp.float32)
    h = jnp.maximum(h + b1_ref[...], 0.0)            # bias-add + ReLU in f32 (VPU)
    # Head layer for ALL nets: block-diagonal (nets*H, nets*2L) -> one wide matmul.
    h = h.astype(wh_ref.dtype)                        # bf16 MXU operand
    out = jnp.dot(h, wh_ref[...], preferred_element_type=jnp.float32) + bh_ref[...]
    if renormalize:
        s = jnp.sum(out, axis=-1, keepdims=True)      # XLU cross-lane reduce
        out = out * pl.reciprocal(s + 1e-10, approx=True)   # EUP slot, ~free
    out_ref[...] = out.astype(out_ref.dtype)          # lane-dense (tb, nets*2L) store


def pack_multi_net_params(per_net_params, compute_dtype=jnp.bfloat16):
    """One-time weight packing (do at parameter-load time, NOT per forward call).

    per_net_params: list of (w1, b1, wm, bm, wl, bl) with weights stored (in, out):
      w1:(D_in,H) b1:(1,H) wm/wl:(H,L) bm/bl:(1,L)
    Returns stacked / block-diagonal arrays ready for the fused kernel."""
    nets = len(per_net_params)
    D_in, H = per_net_params[0][0].shape
    L = per_net_params[0][2].shape[1]
    Dout = 2 * L
    NH, NO = nets * H, nets * Dout

    w1_all = jnp.concatenate([p[0] for p in per_net_params], axis=1)          # (D_in, NH)
    b1_all = jnp.concatenate([p[1] for p in per_net_params], axis=1)          # (1, NH)
    wh_all = jnp.zeros((NH, NO), jnp.float32)                                 # block-diag
    for n, p in enumerate(per_net_params):
        blk = jnp.concatenate([p[2], p[4]], axis=1)                           # (H, 2L)
        wh_all = wh_all.at[n * H:(n + 1) * H, n * Dout:(n + 1) * Dout].set(blk)
    bh_all = jnp.concatenate(
        [jnp.concatenate([p[3], p[5]], axis=1) for p in per_net_params], axis=1)  # (1, NO)

    return {
        "w1": w1_all.astype(compute_dtype),    # MXU operand -> bf16
        "b1": b1_all.astype(jnp.float32),
        "wh": wh_all.astype(compute_dtype),    # MXU operand -> bf16
        "bh": bh_all.astype(jnp.float32),
        "nets": nets, "H": H, "L": L, "D_in": D_in,
    }


def _pick_batch_tile(B, batch_tile):
    """Large, generation-friendly batch tile: multiple of 8, capped so the grid
    keeps >= 2 steps (v7x has 2 TensorCores) and the VMEM footprint stays small."""
    if B <= 8:
        return B                                   # single full-extent block
    tb = min(int(batch_tile), 8192)                # hard cap -> ~24 MiB footprint max
    tb = min(tb, -(-B // 2))                       # keep >= 2 grid steps
    tb = max(8, (tb // 8) * 8)                     # sublane-aligned
    return tb


def multi_separate_nets_forward(x, packed, *, renormalize=False,
                                batch_tile=2048, out_dtype=jnp.float32):
    """x: (B, D_in) in its native dtype (cast to bf16 happens inside the kernel).
    packed: output of pack_multi_net_params.  Returns (B, nets * 2L)."""
    B, D_in = x.shape
    w1, b1, wh, bh = packed["w1"], packed["b1"], packed["wh"], packed["bh"]
    NH, NO = w1.shape[1], wh.shape[1]
    assert packed["D_in"] == D_in

    tb = _pick_batch_tile(B, batch_tile)
    grid = (pl.cdiv(B, tb),)                       # ragged last tile handled by Pallas

    # VMEM footprint estimate (double-buffered x/out tiles + h intermediates + weights).
    out_bytes = jnp.dtype(out_dtype).itemsize
    vmem_est = (2 * tb * D_in * x.dtype.itemsize          # x tiles (double-buffered)
                + 2 * tb * NO * out_bytes                  # out tiles (double-buffered)
                + tb * NH * 6                              # h in f32 + bf16 copy
                + (D_in * NH + NH * NO) * w1.dtype.itemsize
                + (NH + NO) * 4)
    vmem_limit = int(min(max(2 * vmem_est, 32 << 20), 48 << 20))  # within v7x's 64 MiB

    kernel = functools.partial(_multi_net_kernel, renormalize=renormalize)
    out = pl.pallas_call(
        kernel,
        out_shape=jax.ShapeDtypeStruct((B, NO), out_dtype),
        grid=grid,
        in_specs=[
            pl.BlockSpec((tb, D_in), lambda i: (i, 0)),   # x tile, pipelined over batch
            pl.BlockSpec((D_in, NH), lambda i: (0, 0)),   # stacked layer-1 weight (pinned)
            pl.BlockSpec((1, NH),    lambda i: (0, 0)),   # stacked layer-1 bias
            pl.BlockSpec((NH, NO),   lambda i: (0, 0)),   # block-diag fused head weight
            pl.BlockSpec((1, NO),    lambda i: (0, 0)),   # fused head bias
        ],
        out_specs=pl.BlockSpec((tb, NO), lambda i: (i, 0)),
        compiler_params=pltpu.CompilerParams(
            dimension_semantics=("parallel",),            # megacore-shard batch tiles
            vmem_limit_bytes=vmem_limit),
    )(x, w1, b1, wh, bh)
    return out


def init_linear(key, fan_in, fan_out):
    # deterministic init mimicking nn.Linear's uniform(-1/sqrt(fan_in), 1/sqrt(fan_in))
    kw, kb = jax.random.split(key)
    bound = 1.0 / jnp.sqrt(jnp.float32(fan_in))
    w = jax.random.uniform(kw, (fan_in, fan_out), jnp.float32, -bound, bound)  # (in, out)
    b = jax.random.uniform(kb, (1, fan_out), jnp.float32, -bound, bound)
    return w, b


def reference_forward(x, per_net_params, *, renormalize=False, compute_dtype=jnp.bfloat16):
    """Pure-JAX MultiSeparateNets reference (per-net loop + concat), mirroring the
    kernel's bf16-operand / f32-accumulation quantization points."""
    xc = x.astype(compute_dtype)
    outs = []
    for (w1, b1, wm, bm, wl, bl) in per_net_params:
        h = jnp.dot(xc, w1.astype(compute_dtype), preferred_element_type=jnp.float32) + b1
        h = jnp.maximum(h, 0.0).astype(compute_dtype)
        wh = jnp.concatenate([wm, wl], axis=1).astype(compute_dtype)
        bh = jnp.concatenate([bm, bl], axis=1)
        outs.append(jnp.dot(h, wh, preferred_element_type=jnp.float32) + bh)
    out = jnp.concatenate(outs, axis=-1)
    if renormalize:
        out = out / (out.sum(axis=-1, keepdims=True) + 1e-10)
    return out


if __name__ == "__main__":
    nets, input_size, hidden_size, latent_dim = 4, 32, 64, 16
    batch = 16

    root = jax.random.PRNGKey(0)
    keys = jax.random.split(root, 1 + nets)
    x = jax.random.normal(keys[0], (batch, input_size), jnp.float32)

    per_net_params = []
    for kn in keys[1:]:
        k1, k2, k3 = jax.random.split(kn, 3)
        w1, b1 = init_linear(k1, input_size, hidden_size)
        wm, bm = init_linear(k2, hidden_size, latent_dim)
        wl, bl = init_linear(k3, hidden_size, latent_dim)
        per_net_params.append((w1, b1, wm, bm, wl, bl))

    # One-time weight packing (hoisted out of the forward path).
    packed = pack_multi_net_params(per_net_params)

    for renorm in (False, True):
        out = multi_separate_nets_forward(x, packed, renormalize=renorm)
        jax.block_until_ready(out)
        assert out.shape == (batch, nets * 2 * latent_dim), out.shape
        ref = reference_forward(x, per_net_params, renormalize=renorm)
        tol = 1e-3 if not renorm else 2e-2   # renorm divides by a row sum -> looser
        assert jnp.allclose(out, ref, atol=tol, rtol=tol), \
            float(jnp.max(jnp.abs(out - ref)))

    print("KERNEL_OK")
</pallas_src>

<mosaic_0001>
module attributes {stable_mosaic.version = 11 : i64} {
  func.func @_multi_net_kernel(%arg0: i32, %arg1: memref<8x32xf32, #tpu.memory_space<vmem>>, %arg2: memref<32x256xbf16, #tpu.memory_space<vmem>>, %arg3: memref<1x256xf32, #tpu.memory_space<vmem>>, %arg4: memref<256x128xbf16, #tpu.memory_space<vmem>>, %arg5: memref<1x128xf32, #tpu.memory_space<vmem>>, %arg6: memref<8x128xf32, #tpu.memory_space<vmem>>) attributes {dimension_semantics = [#tpu.dimension_semantics<parallel>], iteration_bounds = array<i64: 2>, scalar_prefetch = 0 : i64, scratch_operands = 0 : i64, tpu.core_type = #tpu.core_type<tc>, window_params = [{transform_indices = @transform_0, window_bounds = array<i64: 8, 32>}, {pipeline_mode = #tpu.pipeline_mode<synchronous>, transform_indices = @transform_1, window_bounds = array<i64: 32, 256>}, {pipeline_mode = #tpu.pipeline_mode<synchronous>, transform_indices = @transform_2, window_bounds = array<i64: 1, 256>}, {pipeline_mode = #tpu.pipeline_mode<synchronous>, transform_indices = @transform_3, window_bounds = array<i64: 256, 128>}, {pipeline_mode = #tpu.pipeline_mode<synchronous>, transform_indices = @transform_4, window_bounds = array<i64: 1, 128>}, {transform_indices = @transform_5, window_bounds = array<i64: 8, 128>}]} {
    %c0 = arith.constant 0 : index
    %c0_0 = arith.constant 0 : index
    %0 = vector.load %arg1[%c0, %c0_0] : memref<8x32xf32, #tpu.memory_space<vmem>>, vector<8x32xf32>
    %1 = arith.truncf %0 : vector<8x32xf32> to vector<8x32xbf16>
    %c0_1 = arith.constant 0 : index
    %c0_2 = arith.constant 0 : index
    %2 = vector.load %arg2[%c0_1, %c0_2] : memref<32x256xbf16, #tpu.memory_space<vmem>>, vector<32x256xbf16>
    %cst = arith.constant dense<0.000000e+00> : vector<8x256xf32>
    %3 = tpu.matmul %1, %2, %cst {dimension_numbers = #tpu.dot_dimension_numbers<[1], [0], [0], [1], [0, 0, 1, 1], [], []>} : vector<8x32xbf16>, vector<32x256xbf16>, vector<8x256xf32> -> vector<8x256xf32>
    %c0_3 = arith.constant 0 : index
    %c0_4 = arith.constant 0 : index
    %4 = vector.load %arg3[%c0_3, %c0_4] : memref<1x256xf32, #tpu.memory_space<vmem>>, vector<1x256xf32>
    %5 = vector.broadcast %4 : vector<1x256xf32> to vector<8x256xf32>
    %6 = arith.addf %3, %5 : vector<8x256xf32>
    %cst_5 = arith.constant 0.000000e+00 : f32
    %7 = vector.broadcast %cst_5 : f32 to vector<8x256xf32>
    %8 = arith.maximumf %6, %7 : vector<8x256xf32>
    %9 = arith.truncf %8 : vector<8x256xf32> to vector<8x256xbf16>
    %c0_6 = arith.constant 0 : index
    %c0_7 = arith.constant 0 : index
    %10 = vector.load %arg4[%c0_6, %c0_7] : memref<256x128xbf16, #tpu.memory_space<vmem>>, vector<256x128xbf16>
    %cst_8 = arith.constant dense<0.000000e+00> : vector<8x128xf32>
    %11 = tpu.matmul %9, %10, %cst_8 {dimension_numbers = #tpu.dot_dimension_numbers<[1], [0], [0], [1], [0, 0, 1, 1], [], []>} : vector<8x256xbf16>, vector<256x128xbf16>, vector<8x128xf32> -> vector<8x128xf32>
    %c0_9 = arith.constant 0 : index
    %c0_10 = arith.constant 0 : index
    %12 = vector.load %arg5[%c0_9, %c0_10] : memref<1x128xf32, #tpu.memory_space<vmem>>, vector<1x128xf32>
    %13 = vector.broadcast %12 : vector<1x128xf32> to vector<8x128xf32>
    %14 = arith.addf %11, %13 : vector<8x128xf32>
    %c0_11 = arith.constant 0 : index
    %c0_12 = arith.constant 0 : index
    %15 = vector.load %arg6[%c0_11, %c0_12] : memref<8x128xf32, #tpu.memory_space<vmem>>, vector<8x128xf32>
    tpu.vector_store %arg6[%c0_11, %c0_12], %14 {strides = array<i32>} : memref<8x128xf32, #tpu.memory_space<vmem>>, vector<8x128xf32>,
    return
  }
  func.func @transform_0(%arg0: i32) -> (i32, i32) {
    %c0_i32 = arith.constant 0 : i32
    %c0_i32_0 = arith.constant 0 : i32
    return %arg0, %c0_i32 : i32, i32
  }
  func.func @transform_1(%arg0: i32) -> (i32, i32) {
    %c0_i32 = arith.constant 0 : i32
    %c0_i32_0 = arith.constant 0 : i32
    %c0_i32_1 = arith.constant 0 : i32
    return %c0_i32, %c0_i32_0 : i32, i32
  }
  func.func @transform_2(%arg0: i32) -> (i32, i32) {
    %c0_i32 = arith.constant 0 : i32
    %c0_i32_0 = arith.constant 0 : i32
    %c0_i32_1 = arith.constant 0 : i32
    return %c0_i32, %c0_i32_0 : i32, i32
  }
  func.func @transform_3(%arg0: i32) -> (i32, i32) {
    %c0_i32 = arith.constant 0 : i32
    %c0_i32_0 = arith.constant 0 : i32
    %c0_i32_1 = arith.constant 0 : i32
    return %c0_i32, %c0_i32_0 : i32, i32
  }
  func.func @transform_4(%arg0: i32) -> (i32, i32) {
    %c0_i32 = arith.constant 0 : i32
    %c0_i32_0 = arith.constant 0 : i32
    %c0_i32_1 = arith.constant 0 : i32
    return %c0_i32, %c0_i32_0 : i32, i32
  }
  func.func @transform_5(%arg0: i32) -> (i32, i32) {
    %c0_i32 = arith.constant 0 : i32
    %c0_i32_0 = arith.constant 0 : i32
    return %arg0, %c0_i32 : i32, i32
  }
}

</mosaic_0001>

<bundles_post_ra>
// kernel: tpu_custom_call.1
= control target key start
LH: loop header
LB: loop body
LE: loop exit
PB: predicated region body
PF: predicated region fallthrough
CT: control target
= control target key end

     0   :  { %10 = vsyncpa [#allocation3], 0  ;;  %s1160_s0 = inlined_call_operand.hbm [shape: f32[16,32], index: 0, kind: input, shape index: {}]   ;;  %s1161_s1 = inlined_call_operand.hbm [shape: bf16[32,256], index: 1, kind: input, shape index: {}]   ;;  %s1162_s2 = inlined_call_operand.vmem [shape: f32[1,256], index: 2, kind: input, shape index: {}]   ;;  %s1163_s3 = inlined_call_operand.hbm [shape: bf16[256,128], index: 3, kind: input, shape index: {}]   ;;  %s1164_s4 = inlined_call_operand.vmem [shape: f32[1,128], index: 4, kind: input, shape index: {}]   ;;  %s1165_s5 = inlined_call_operand.hbm [shape: f32[16,128], index: 5, kind: output, shape index: {}]  }
   0x1   :  { %12 = vsyncpa [#allocation3 + $0x1], 0 }
   0x2   :  { %13 = vsyncpa [#allocation6], 0 }
   0x3   :  { %14 = vsyncpa [#allocation4], 0 }
   0x4   :  { %16 = vsyncpa [#allocation4 + $0x1], 0  ;;  %s979_s18 = smov 0   ;;  %s981_s19 = smov 0  }
   0x5   :  { %s983_s20 = smov 0   ;;  %s985_s21 = smov 0  }
   0x6 LB: > { %s1000_s22 = sadd.s32 4294967295, %s938_s21   ;;  %s636_s23 = sadd.s32 4294967294, %s938_s21   ;;  %s938_s21 = sphi %s985_s21, %s1187_s21   ;;  %s934_s20 = sphi %s983_s20, %s1186_s20   ;;  %s930_s19 = sphi %s981_s19, %s1185_s19   ;;  %s926_s18 = sphi %s979_s18, %s1184_s18  }
   0x7   : > { %p42_p0 = scmp.ne.s32.totalorder %s930_s19, %s926_s18  ;;  %p1166_p1 = scmp.eq.s32.totalorder %s1000_s22, 0 }
   0x8   : > { %p156_p3 = scmp.eq.s32.totalorder %s636_s23, 1  ;;  %p637_p5 = scmp.ge.s32.totalorder %s938_s21, 1 }
   0x9   : > { %p1009_p4 = por %p1166_p1, %p42_p0  ;;  %p163_p7 = scmp.lt.s32.totalorder %s938_s21, 3 }
   0xa   : > { %p1014_p6 = por %p156_p3, %p42_p0  ;;  %s940_s27 = smov [#allocation5]  }
   0xb   : > { %s1170_s24 = scalar_select %p1009_p4, 1, 0 }
   0xc   : > { %s1171_s25 = scalar_select %p1014_p6, 1, 0 }
   0xd   : > { %p1019_p8 = pnand %p637_p5, %p163_p7  ;;  %s175_s28 = sshll.u32 %s940_s27, 4  ;;  %s176_s28 = int_to_ptr.vmem [resolvable:$true] %s175_s28 }
   0xe   : > { %s941_s30 = smov [#allocation7]   ;;  %s801_s7 = scalar_lea.vmem %s176_s28, 512 }
   0xf   : > { %s1172_s26 = scalar_select %p1019_p8, 1, 0 }
  0x10   : > { %p708_p9 = pneg %p1019_p8  ;;  %s191_s6 = sshll.u32 %s941_s30, 4  ;;  %s192_s6 = int_to_ptr.vmem [resolvable:$true] %s191_s6 }
  0x11   : > { %p802_p13 = scmp.ne.s32.totalorder %s176_s28, %s801_s7  ;;  %p809_p5 = scmp.lt.s32.totalorder %s176_s28, %s176_s28 }
  0x12   : > { %p1028_p11 = pnand %p708_p9, %p1166_p1  ;;  %p810_p7 = scmp.lt.s32.totalorder %s801_s7, %s801_s7 }
  0x14   : > { %p792_p12 = pneg %p1028_p11  ;;  %p811_p10 = por %p810_p7, %p809_p5 }
  0x16   : > { %p804_p0 = pnand %p802_p13, %p792_p12 }
  0x18   : > { %p805_p3 = pneg %p804_p0 }
  0x1a   : > { %p812_p9 = pnand %p811_p10, %p805_p3 }
  0x1c   : > { %815 = shalt.err (!%p812_p9)
}
  0x1d   : > { %s942_s8 = smov 128   ;;  %s943_s9 = smov 8  }
  0x1e   : > { %711 = dma.hbm_to_vmem [thread:$0]  (!%p1028_p11), %s1161_s1, 512, %s176_s28, [#allocation6], %s942_s8, %s942_s8, %s943_s9  }
  0x1f   : > { %s827_s12 = scalar_lea.vmem %s192_s6, 2048  ;;  %p835_p2 = scmp.lt.s32.totalorder %s192_s6, %s192_s6 }
  0x20   : > { %p828_p1 = scmp.ne.s32.totalorder %s192_s6, %s827_s12  ;;  %p836_p6 = scmp.lt.s32.totalorder %s827_s12, %s827_s12 }
  0x22   : > { %p830_p13 = pnand %p828_p1, %p792_p12  ;;  %p837_p5 = por %p836_p6, %p835_p2 }
  0x24   : > { %p831_p0 = pneg %p830_p13 }
  0x26   : > { %p838_p10 = pnand %p837_p5, %p831_p0 }
  0x28   : > { %841 = shalt.err (!%p838_p10)
}
  0x29   : > { %s944_s13 = smov 64   ;;  %s945_s14 = smov 4  }
  0x2a   : > { %714 = dma.hbm_to_vmem [thread:$0]  (!%p1028_p11), %s1163_s3, 2048, %s192_s6, [#allocation6], %s944_s13, %s944_s13, %s945_s14  }
  0x2b   : > { %s1051_s17 = sadd.s32 1, %s938_s21   ;;  %s29_s27 = sadd.s32 1, %s934_s20 }
  0x2c   : > { %s26_s23 = ssub.s32 %s938_s21, %s1051_s17  ;;  %p36_p2 = scmp.ne.s32.totalorder %s934_s20, %s930_s19 }
  0x2d   : > { %p27_p1 = scmp.eq.s32.totalorder %s26_s23, 0  ;;  %p37_p6 = scmp.eq.s32.totalorder %s938_s21, 0 }
  0x2e   : > { %p1174_p3 = scmp.eq.s32.totalorder %s1000_s22, 1  ;;  %p725_p9 = scmp.lt.s32.totalorder %s938_s21, 2 }
  0x2f   : > { %s1060_s28 = scalar_select %p27_p1, %s934_s20, %s29_s27  }
  0x30   : > { %p38_p12 = por %p37_p6, %p36_p2  ;;  %p1064_p7 = por %p1174_p3, %p36_p2 }
  0x31   : > { %s208_s29 = sand.u32 1, %s934_s20   ;;  %s642_s6 = sshll.u32 %s938_s21, 7 }
  0x32   : > { %s1175_s30 = scalar_select %p1064_p7, 1, 0 }
  0x33   : > { %s641_s7 = sshll.u32 %s208_s29, 3  ;;  %s1074_s10 = scalar_lea.hbm %s1160_s0, %s642_s6 }
  0x34   : > { %s212_s11 = scalar_lea.vmem [#allocation2], %s641_s7  ;;  %p1076_p11 = pnand %p725_p9, %p38_p12 }
  0x35   : > { %s219_s12 = sshll.u32 %s212_s11, 4  ;;  %s209_s14 = scalar_lea.sflag [#allocation3], %s208_s29  ;;  %s220_s12 = int_to_ptr.vmem [resolvable:$true] %s219_s12 }
  0x36   : > { %s842_s15 = scalar_lea.hbm %s1074_s10, 128  ;;  %p844_p0 = pneg %p1076_p11 }
  0x37   : > { %p843_p13 = scmp.ne.s32.totalorder %s1074_s10, %s842_s15  ;;  %s847_s27 = scalar_lea.hbm %s1160_s0, 256 }
  0x38   : > { %p848_p1 = scmp.lt.s32.totalorder %s1074_s10, %s1160_s0  ;;  %p849_p2 = scmp.lt.s32.totalorder %s847_s27, %s842_s15 }
  0x39   : > { %p845_p5 = pnand %p844_p0, %p843_p13 }
  0x3a   : > { %p850_p6 = por %p849_p2, %p848_p1 }
  0x3b   : > { %p846_p10 = pneg %p845_p5 }
  0x3d   : > { %p851_p12 = pnand %p850_p6, %p846_p10 }
  0x3f   : > { %854 = shalt.err (!%p851_p12)
}
  0x40   : > { %s855_s8 = scalar_lea.vmem %s220_s12, 128  ;;  %s946_s29 = smov [#allocation2]  }
  0x41   : > { %p856_p3 = scmp.ne.s32.totalorder %s220_s12, %s855_s8  ;;  %s860_s9 = sshll.u32 %s946_s29, 4  ;;  %s861_s9 = int_to_ptr.vmem [resolvable:$false] %s860_s9 }
  0x42   : > { %s862_s11 = scalar_lea.vmem %s861_s9, 256  ;;  %p863_p13 = scmp.lt.s32.totalorder %s220_s12, %s861_s9 }
  0x43   : > { %p858_p9 = pnand %p856_p3, %p844_p0  ;;  %p864_p5 = scmp.lt.s32.totalorder %s862_s11, %s855_s8 }
  0x45   : > { %p859_p7 = pneg %p858_p9  ;;  %p865_p4 = por %p864_p5, %p863_p13 }
  0x47   : > { %p866_p8 = pnand %p865_p4, %p859_p7 }
  0x49   : > { %869 = shalt.err (!%p866_p8)
}
  0x4a   : > { %718 = dma.hbm_to_vmem [thread:$0]  (!%p1076_p11), %s1074_s10, 128, %s220_s12, %s209_s14  }
  0x4b   : > { %p1177_p10 = scmp.ne.s32.totalorder %s1172_s26, 0 }
  0x4c   : > { %s1097_s15 = sand.u32 (!%p1177_p10), 1, %s930_s19   ;;  %p1178_p4 = scmp.ne.s32.totalorder (!%p1177_p10), %s1170_s24, 0 }
  0x4d   : > { %228 = sbr.rel (%p1177_p10) target bundleno = 509 (0x1fd), region = 40  ;;  %s644_s16 = sshll.u32 (!%p1177_p10), %s1097_s15, 3 }
  0x4e   : > { %s231_s23 = scalar_lea.sflag (!%p1177_p10), [#allocation3], %s1097_s15  ;;  %s234_s27 = scalar_lea.vmem (!%p1177_p10), [#allocation2], %s644_s16 }
  0x52   : > { %913 = dma.done.wait (%p1178_p4), %s231_s23, 128  }
  0x53   : > { %915 = vsyncadd (%p1178_p4), %s231_s23, 4294967168  ;;  %p1179_p8 = scmp.eq.s32.totalorder %s1000_s22, 0 }
  0x55   : > { %917 = dma.done.wait (%p1179_p8), [#allocation6], 2560   ;;  %p1180_p7 = pmov %p1179_p8 }
  0x56   : > { %v947_v0 = vmov 0   ;;  %v768_v1 = vld [vmem:[#allocation5 + $0x14] ss:$8 sps:$4 sm:$0xff]   ;;  %v770_v2 = vld [vmem:[#allocation5 + $0x10] ss:$8 sps:$4 sm:$0xff]   ;;  %vm308_vm0 = vcmask 261120   ;;  %v278_v23 = vlaneseq }
  0x57   : > { %919 = vsyncadd (%p1180_p7), [#allocation6], 4294964736  ;;  %344 = vmatprep.mubr.bf16.mxu0 %v947_v0  ;;  %324 = vmatprep.subr.bf16.mxu0 %v768_v1  ;;  %v771_v3 = vld [vmem:[#allocation5 + $0x4] ss:$8 sps:$4 sm:$0xff]   ;;  %v773_v4 = vld [vmem:[#allocation5] ss:$8 sps:$4 sm:$0xff]  }
  0x58   : > { %v270_v5 = vld [vmem:[%s234_s27] sm:$0xff]  ;;  %325 = vmatpush1.bf16.msra.mxu0 %v770_v2  ;;  %v778_v11 = vld [vmem:[#allocation7 + $0x68] sm:$0xff]   ;;  %v780_v13 = vld [vmem:[#allocation7 + $0x60] sm:$0xff]   ;;  %v279_v24 = vshrl.u32 %v278_v23, 7  ;;  %s671_s13 = sshll.u32 %s1000_s22, 7  ;;  %s268_s14 = scalar_lea.vmem [#allocation8], %s644_s16 }
  0x59   : > { %v774_v6 = vld [vmem:[#allocation7 + $0x78] sm:$0xff]   ;;  %326 = vmatprep.subr.bf16.mxu0 %v771_v3  ;;  %v776_v8 = vld [vmem:[#allocation7 + $0x70] sm:$0xff]   ;;  %v271_v9 = vpack.c.bf16 %v270_v5, %v270_v5  ;;  %v779_v12 = vld [vmem:[#allocation7 + $0x28] sm:$0xff]   ;;  %s547_s6 = sshll.u32 %s268_s14, 4  ;;  %s1123_s29 = scalar_lea.hbm %s1165_s5, %s671_s13  ;;  %s548_s6 = int_to_ptr.vmem [resolvable:$true] %s547_s6 }
  0x5a   : > { %v775_v7 = vld [vmem:[#allocation7 + $0x38] sm:$0xff]   ;;  %674 = vmatprep.subr.bf16.mxu1 %v774_v6  ;;  %v777_v10 = vld [vmem:[#allocation7 + $0x30] sm:$0xff]   ;;  %v781_v14 = vld [vmem:[#allocation7 + $0x20] sm:$0xff]   ;;  %v280_v25 = vsub.s32 0, %v279_v24  ;;  %v284_v27 = vsub.s32 1, %v279_v24  ;;  %s534_s9 = scalar_lea.sflag [#allocation4], %s1097_s15 }
  0x5b   : > { %675 = vmatpush3.bf16.msra.mxu1 %v775_v7  ;;  %v782_v15 = vld [vmem:[#allocation7 + $0x58] sm:$0xff]   ;;  %v784_v17 = vld [vmem:[#allocation7 + $0x50] sm:$0xff]   ;;  %v786_v19 = vld [vmem:[#allocation7 + $0x48] sm:$0xff]   ;;  %s870_s11 = scalar_lea.vmem %s548_s6, 128  ;;  %p1181_p0 = scmp.ne.s32.totalorder %s1175_s30, 0 }
  0x5c   : > { %327 = vmatpush1.bf16.msra.mxu0 %v773_v4  ;;  %676 = vmatprep.subr.bf16.mxu1 %v776_v8  ;;  %v783_v16 = vld [vmem:[#allocation7 + $0x18] sm:$0xff]   ;;  %v785_v18 = vld [vmem:[#allocation7 + $0x10] sm:$0xff]   ;;  %v787_v20 = vld [vmem:[#allocation7 + $0x8] sm:$0xff]   ;;  %p871_p11 = scmp.ne.s32.totalorder %s548_s6, %s870_s11  ;;  %s948_s22 = smov [#allocation8]  }
  0x5d   : > { %v788_v21 = vld [vmem:[#allocation7 + $0x40] sm:$0xff]   ;;  %v276_v26 = vld [vmem:[%s1162_s2] sm:$0x3]  ;;  %s874_s16 = sshll.u32 %s948_s22, 4  ;;  %s875_s16 = int_to_ptr.vmem [resolvable:$false] %s874_s16 }
  0x5e   : > { %v789_v22 = vld [vmem:[#allocation7] sm:$0xff]   ;;  %v281_v28 = vrot.slane %v276_v26, %v280_v25  ;;  %v285_v29 = vrot.slane %v276_v26, %v284_v27  ;;  %v653_v41 = vld [vmem:[%s1164_s4] ss:$0 sm:$0xff]  ;;  %p872_p1 = pnand %p871_p11, %p1181_p0  ;;  %s876_s23 = scalar_lea.vmem %s875_s16, 256 }
  0x5f   : > { %652 = vmatmul.mubr.msk.bf16.vlgmr.msra.gmra.mxu0 %vm308_vm0, %v271_v9  ;;  %677 = vmatpush3.bf16.msra.mxu1 %v777_v10  ;;  %p877_p6 = scmp.lt.s32.totalorder %s548_s6, %s875_s16  ;;  %p878_p12 = scmp.lt.s32.totalorder %s876_s23, %s870_s11 }
  0x60   : > { %678 = vmatprep.subr.bf16.mxu1 %v778_v11  ;;  %p873_p2 = pneg %p872_p1 }
  0x61   : > { %p879_p3 = por %p878_p12, %p877_p6 }
  0x63   : > { %679 = vmatpush3.bf16.msra.mxu1 %v779_v12  ;;  %p880_p9 = pnand %p879_p3, %p873_p2 }
  0x64   : > { %680 = vmatprep.subr.bf16.mxu1 %v780_v13 }
  0x67   : > { %681 = vmatpush3.bf16.msra.mxu1 %v781_v14 }
  0x68   : > { %682 = vmatprep.subr.bf16.mxu1 %v782_v15 }
  0x6b   : > { %683 = vmatpush3.bf16.msra.mxu1 %v783_v16 }
  0x6c   : > { %684 = vmatprep.subr.bf16.mxu1 %v784_v17 }
  0x6f   : > { %685 = vmatpush3.bf16.msra.mxu1 %v785_v18 }
  0x70   : > { %686 = vmatprep.subr.bf16.mxu1 %v786_v19 }
  0x73   : > { %687 = vmatpush3.bf16.msra.mxu1 %v787_v20 }
  0x74   : > { %688 = vmatprep.subr.bf16.mxu1 %v788_v21 }
  0x77   : > { %689 = vmatpush3.bf16.msra.mxu1 %v789_v22 }
 0x11f   : > { %v346_v30 = vpop.f32.mrf.mxu0 }
 0x120   : > { %v347_v31 = vadd.f32 %v346_v30, %v281_v28 }
 0x121   : > { %v348_v32 = vpop.f32.mrf.mxu0 }
 0x122   : > { %v349_v33 = vadd.f32 %v348_v32, %v285_v29  ;;  %v353_v34 = vmax.f32 %v347_v31, 0.0 }
 0x123   : > { %v350_v35 = vpop.f32.mrf.mxu0 }
 0x124   : > { %v354_v36 = vmax.f32 %v349_v33, 0.0  ;;  %v355_v39 = vpack.c.bf16 %v353_v34, %v353_v34 }
 0x125   : > { %v351_v37 = vpop.f32.mrf.mxu0 }
 0x126   : > { %v356_v38 = vpack.c.bf16 %v354_v36, %v354_v36 }
 0x128   : > { %524 = vmatprep.mubr.bf16.mxu1 %v356_v38 }
 0x129   : > { %525 = vmatmul.mubr.bf16.vlgmr.msra.gmra.mxu1 %v355_v39 }
 0x1e9   : > { %v690_v40 = vpop.f32.mrf.mxu1 }
 0x1eb   : > { %v691_v42 = vpop.f32.mrf.mxu1 }
 0x1ec   : > { %v692_v43 = vadd.f32 %v691_v42, %v690_v40 }
 0x1ed   : > { %v693_v44 = vpop.f32.mrf.mxu1 }
 0x1ee   : > { %v527_v45 = vadd.f32 %v692_v43, %v653_v41 }
 0x1ef   : > { %v694_v46 = vpop.f32.mrf.mxu1 }
 0x1f0   : > { %532 = vst [vmem:[%s268_s14] sm:$0xff] %v527_v45 }
 0x1f1   : > { %883 = shalt.err (!%p880_p9)
}
 0x1f2   : > { %s884_s27 = scalar_lea.hbm %s1123_s29, 128  ;;  %s888_s26 = scalar_lea.hbm %s1165_s5, 256 }
 0x1f3   : > { %p885_p13 = scmp.ne.s32.totalorder %s1123_s29, %s884_s27  ;;  %p889_p4 = scmp.lt.s32.totalorder %s1123_s29, %s1165_s5 }
 0x1f4   : > { %p890_p8 = scmp.lt.s32.totalorder %s888_s26, %s884_s27 }
 0x1f5   : > { %p886_p5 = pnand %p885_p13, %p1181_p0 }
 0x1f6   : > { %p891_p7 = por %p890_p8, %p889_p4 }
 0x1f7   : > { %p887_p10 = pneg %p886_p5 }
 0x1f9   : > { %p892_p11 = pnand %p891_p7, %p887_p10 }
 0x1fb   : > { %895 = shalt.err (!%p892_p11)
}
 0x1fc   : > { %706 = dma.vmem_to_hbm [thread:$0]  (%p1181_p0), %s548_s6, 128, %s1123_s29, %s534_s9  }
 0x1fd PF: > { %s559_s13 = sand.u32 1, %s926_s18   ;;  %p1182_p1 = scmp.ne.s32.totalorder %s1171_s25, 0 }
 0x1fe   : > { %p1183_p2 = scmp.ge.s32.totalorder %s938_s21, 2  ;;  %s560_s14 = scalar_lea.sflag [#allocation4], %s559_s13 }
 0x200   : > { %p720_p6 = pnand %p1183_p2, %p1182_p1 }
 0x202   : > { %p721_p12 = pneg %p720_p6 }
 0x204   : > { %921 = dma.done.wait (%p721_p12), %s560_s14, 128  }
 0x205   : > { %923 = vsyncadd (%p721_p12), %s560_s14, 4294967168  ;;  %p19_p3 = scmp.ge.s32.totalorder %s1051_s17, 4   ;;  %s1184_s18 = smov %s930_s19 }
 0x206   : > { %s1185_s19 = smov %s934_s20  ;;  %s1186_s20 = smov %s1060_s28 }
 0x207   : > { %s1187_s21 = smov %s1051_s17  ;;  %21 = sbr.rel (!%p19_p3) target bundleno = 6 (0x6), region = 93 }
 0x20c   :  { %565 = vsyncpa [#allocation3], 1 }
 0x20d   :  { %567 = vsyncpa [#allocation3 + $0x1], 1 }
 0x20e   :  { %568 = vsyncpa [#allocation6], 1 }
 0x20f   :  { %569 = vsyncpa [#allocation4], 1 }
 0x210   :  { %571 = vsyncpa [#allocation4 + $0x1], 1 }

</bundles_post_ra>
